<compile_context>
chip_gen: v7x
topology: tpu7x:2x2x1
jax: 0.10.0
libtpu: 0.0.40
codegen_flags: <defaults>
</compile_context>

<pallas_src>
import math

import jax
import jax.numpy as jnp
from jax.experimental import pallas as pl
from jax.experimental.pallas import tpu as pltpu


# ----------------------------------------------------------------------------
# Module constants (BesselBasis defaults) and init-time statistics (plain JAX)
# ----------------------------------------------------------------------------
RCUT = 10.0          # BesselBasis default rcut
NUM_BASIS = 8        # BesselBasis default num_basis
PREFACTOR = 2.0 / RCUT
_LANE = 128


def _bessel_basis_ref(x, weights):
    """Pure-JAX reference of BesselBasis.forward (used for init stats & checks)."""
    num = jnp.sin(weights * x[..., None] / RCUT)
    return PREFACTOR * (num / x[..., None])


def make_normalized_basis_params(r_max, r_min=0.0, n=4000, norm_basis_mean_shift=True):
    """Mirror NormalizedBasis.__init__ (the n-sample statistic estimation)."""
    weights = jnp.linspace(1.0, float(NUM_BASIS), NUM_BASIS, dtype=jnp.float32) * math.pi
    rs = jnp.linspace(r_min, r_max, n + 1, dtype=jnp.float32)[1:]
    bs = _bessel_basis_ref(rs, weights)          # (n, num_basis)
    if norm_basis_mean_shift:
        basis_mean = jnp.mean(bs, axis=0)
        basis_std = jnp.std(bs, axis=0, ddof=1)  # torch.std_mean is unbiased
    else:
        basis_std = jnp.sqrt(jnp.mean(jnp.square(bs)))
        basis_std = jnp.broadcast_to(basis_std, (NUM_BASIS,))
        basis_mean = jnp.zeros((NUM_BASIS,), jnp.float32)
    inv_std = 1.0 / basis_std
    return weights, basis_mean.astype(jnp.float32), inv_std.astype(jnp.float32)


# ----------------------------------------------------------------------------
# Pallas kernel (lane-dense: N on lanes, basis on sublanes)
#   out[b, i] = sin(w_scaled[b] * x[i]) * (scale[b] / x[i]) - offset[b]
#   with w_scaled = w/rcut, scale = prefactor*inv_std, offset = mean*inv_std
# ----------------------------------------------------------------------------
def _norm_basis_kernel(x_ref, p_ref, out_ref):
    x = x_ref[...]                 # (1, TILE)
    w = p_ref[:, 0:1]              # (NUM_BASIS, 1)   weights / rcut
    scale = p_ref[:, 1:2]          # (NUM_BASIS, 1)   prefactor * inv_std
    offset = p_ref[:, 2:3]         # (NUM_BASIS, 1)   mean * inv_std

    # EUP approximate reciprocal + two Newton-Raphson refinements (~1 ulp),
    # computed once per point on the (1, TILE) row (1/8 of a full-slab op).
    r = pl.reciprocal(x, approx=True)
    r = r * (2.0 - x * r)
    r = r * (2.0 - x * r)

    out_ref[...] = jnp.sin(w * x) * (scale * r) - offset     # (NUM_BASIS, TILE)


def normalized_basis_forward(x, weights, mean, inv_std, *, tile_n=32768):
    """NormalizedBasis.forward. x: arbitrary-shaped float32 array (values > 0)."""
    orig_shape = x.shape
    x_flat = x.reshape(-1).astype(jnp.float32)
    n = x_flat.shape[0]

    # Pad only to a multiple of the 128-lane width (skipped entirely when aligned).
    n_pad = (-n) % _LANE
    if n_pad:
        x_flat = jnp.pad(x_flat, (0, n_pad), constant_values=1.0)
    n_tot = n + n_pad

    # Tile along the lane axis; both tile_n and n_tot are multiples of 128.
    tile_n = max(_LANE, (tile_n // _LANE) * _LANE)
    tile = min(tile_n, n_tot)
    grid = (pl.cdiv(n_tot, tile),)          # ragged last block handled by Pallas masking

    x2d = x_flat.reshape(1, n_tot)

    # Fold constants once in the wrapper.
    w_scaled = (weights / RCUT).astype(jnp.float32)
    scale = (PREFACTOR * inv_std).astype(jnp.float32)
    offset = (mean * inv_std).astype(jnp.float32)
    params = jnp.stack([w_scaled, scale, offset], axis=-1)   # (NUM_BASIS, 3)

    out = pl.pallas_call(
        _norm_basis_kernel,
        out_shape=jax.ShapeDtypeStruct((NUM_BASIS, n_tot), jnp.float32),
        grid_spec=pltpu.PrefetchScalarGridSpec(
            num_scalar_prefetch=0,
            grid=grid,
            in_specs=[
                pl.BlockSpec((1, tile), lambda i: (0, i)),
                pl.BlockSpec((NUM_BASIS, 3), lambda i: (0, 0)),
            ],
            out_specs=pl.BlockSpec((NUM_BASIS, tile), lambda i: (0, i)),
        ),
        compiler_params=pltpu.CompilerParams(
            dimension_semantics=("parallel",)),
    )(x2d, params)

    if n_pad:
        out = out[:, :n]
    # Basis-major (NUM_BASIS, N) -> (..., NUM_BASIS); XLA fuses the slice into this
    # transpose, so it is a single extra pass required only to match module layout.
    return out.T.reshape(orig_shape + (NUM_BASIS,))


# ----------------------------------------------------------------------------
if __name__ == "__main__":
    # NormalizedBasis(r_max=10.0, r_min=0.0, n=4000, norm_basis_mean_shift=True)
    weights, mean, inv_std = make_normalized_basis_params(r_max=10.0, r_min=0.0, n=4000)

    key = jax.random.PRNGKey(0)
    k1, k2, k3 = jax.random.split(key, 3)

    checks = [
        # (shape, key, tile_n) — exercise aligned, lane-padded, and multi-block paths.
        ((4, 16, 16), k1, 32768),        # 1024 pts: aligned, single block, no pad/slice
        ((7, 13), k2, 32768),            # 91 pts: lane padding + slice path
        ((2, 4, 16, 18), k3, 512),       # 2304 pts: 5-step grid with ragged last block
    ]
    for shape, k, tn in checks:
        x = jax.random.uniform(k, shape, dtype=jnp.float32, minval=0.5, maxval=10.0)
        out = normalized_basis_forward(x, weights, mean, inv_std, tile_n=tn)
        out = jax.block_until_ready(out)

        ref = (_bessel_basis_ref(x, weights) - mean) * inv_std
        assert out.shape == shape + (NUM_BASIS,)
        assert jnp.allclose(out, ref, atol=2e-5, rtol=2e-5), f"mismatch for shape {shape}"

    print("KERNEL_OK")
</pallas_src>

<mosaic_0001>
module attributes {stable_mosaic.version = 11 : i64} {
  func.func @_norm_basis_kernel(%arg0: i32, %arg1: memref<1x1024xf32, #tpu.memory_space<vmem>>, %arg2: memref<8x3xf32, #tpu.memory_space<vmem>>, %arg3: memref<8x1024xf32, #tpu.memory_space<vmem>>) attributes {dimension_semantics = [#tpu.dimension_semantics<parallel>], iteration_bounds = array<i64: 1>, scalar_prefetch = 0 : i64, scratch_operands = 0 : i64, tpu.core_type = #tpu.core_type<tc>, window_params = [{transform_indices = @transform_0, window_bounds = array<i64: 1, 1024>}, {pipeline_mode = #tpu.pipeline_mode<synchronous>, transform_indices = @transform_1, window_bounds = array<i64: 8, 3>}, {transform_indices = @transform_2, window_bounds = array<i64: 8, 1024>}]} {
    %c0 = arith.constant 0 : index
    %c0_0 = arith.constant 0 : index
    %0 = vector.load %arg1[%c0, %c0_0] : memref<1x1024xf32, #tpu.memory_space<vmem>>, vector<1x1024xf32>
    %c0_1 = arith.constant 0 : index
    %c0_2 = arith.constant 0 : index
    %1 = vector.load %arg2[%c0_1, %c0_2] : memref<8x3xf32, #tpu.memory_space<vmem>>, vector<8x1xf32>
    %c0_3 = arith.constant 0 : index
    %c1 = arith.constant 1 : index
    %2 = vector.load %arg2[%c0_3, %c1] : memref<8x3xf32, #tpu.memory_space<vmem>>, vector<8x1xf32>
    %c0_4 = arith.constant 0 : index
    %c2 = arith.constant 2 : index
    %3 = vector.load %arg2[%c0_4, %c2] : memref<8x3xf32, #tpu.memory_space<vmem>>, vector<8x1xf32>
    %4 = tpu.reciprocal %0 {approx = true} : vector<1x1024xf32> -> vector<1x1024xf32>
    %5 = arith.mulf %0, %4 : vector<1x1024xf32>
    %cst = arith.constant 2.000000e+00 : f32
    %6 = vector.broadcast %cst : f32 to vector<1x1024xf32>
    %7 = arith.subf %6, %5 : vector<1x1024xf32>
    %8 = arith.mulf %4, %7 : vector<1x1024xf32>
    %9 = arith.mulf %0, %8 : vector<1x1024xf32>
    %cst_5 = arith.constant 2.000000e+00 : f32
    %10 = vector.broadcast %cst_5 : f32 to vector<1x1024xf32>
    %11 = arith.subf %10, %9 : vector<1x1024xf32>
    %12 = arith.mulf %8, %11 : vector<1x1024xf32>
    %13 = vector.broadcast %1 : vector<8x1xf32> to vector<8x1024xf32>
    %14 = vector.broadcast %0 : vector<1x1024xf32> to vector<8x1024xf32>
    %15 = arith.mulf %13, %14 : vector<8x1024xf32>
    %16 = math.sin %15 : vector<8x1024xf32>
    %17 = vector.broadcast %2 : vector<8x1xf32> to vector<8x1024xf32>
    %18 = vector.broadcast %12 : vector<1x1024xf32> to vector<8x1024xf32>
    %19 = arith.mulf %17, %18 : vector<8x1024xf32>
    %20 = arith.mulf %16, %19 : vector<8x1024xf32>
    %21 = vector.broadcast %3 : vector<8x1xf32> to vector<8x1024xf32>
    %22 = arith.subf %20, %21 : vector<8x1024xf32>
    %c0_6 = arith.constant 0 : index
    %c0_7 = arith.constant 0 : index
    %23 = vector.load %arg3[%c0_6, %c0_7] : memref<8x1024xf32, #tpu.memory_space<vmem>>, vector<8x1024xf32>
    tpu.vector_store %arg3[%c0_6, %c0_7], %22 {strides = array<i32>} : memref<8x1024xf32, #tpu.memory_space<vmem>>, vector<8x1024xf32>,
    return
  }
  func.func @transform_0(%arg0: i32) -> (i32, i32) {
    %c0_i32 = arith.constant 0 : i32
    %c0_i32_0 = arith.constant 0 : i32
    return %c0_i32, %arg0 : i32, i32
  }
  func.func @transform_1(%arg0: i32) -> (i32, i32) {
    %c0_i32 = arith.constant 0 : i32
    %c0_i32_0 = arith.constant 0 : i32
    %c0_i32_1 = arith.constant 0 : i32
    return %c0_i32, %c0_i32_0 : i32, i32
  }
  func.func @transform_2(%arg0: i32) -> (i32, i32) {
    %c0_i32 = arith.constant 0 : i32
    %c0_i32_0 = arith.constant 0 : i32
    return %c0_i32, %arg0 : i32, i32
  }
}

</mosaic_0001>

<bundles_post_ra>
// kernel: tpu_custom_call.1
= control target key start
LH: loop header
LB: loop body
LE: loop exit
PB: predicated region body
PF: predicated region fallthrough
CT: control target
= control target key end

     0   :  { %s2064_s0 = inlined_call_operand.vmem [shape: f32[1,1024], index: 0, kind: input, shape index: {}]   ;;  %s2065_s1 = inlined_call_operand.vmem [shape: f32[8,3], index: 1, kind: input, shape index: {}]   ;;  %s2066_s2 = inlined_call_operand.hbm [shape: f32[8,1024], index: 2, kind: output, shape index: {}]  }
   0x1   :  { %v13_v0 = vld [vmem:[%s2065_s1] sm:$0xff] }
   0x2   :  { %7 = vsyncpa [#allocation3], 0  ;;  %v1138_v1 = vmov 0   ;;  %v1139_v2 = vmov 2   ;;  %v1140_v3 = vmov 1   ;;  %v27_v4 = vlaneseq  ;;  %v1173_v8 = vld [vmem:[%s2064_s0] sm:$0xff] }
   0x3   :  { %1076 = vset.pattern.permute.xlu0 %v1138_v1  ;;  %1078 = vset.pattern.permute.xlu1 %v1139_v2  ;;  %1080 = vrcp.f32 %v1173_v8  ;;  %v1141_v48 = vmov 683565275   ;;  %v1142_v52 = vmov 2475754826   ;;  %v1143_v54 = vmov 2131351028  }
   0x4   :  { %23 = vperm.xlu0 %1076, %v13_v0   ;;  %969 = vperm.xlu1 %1078, %v13_v0   ;;  %v1166_v5 = vshrl.u32 %v27_v4, 7  ;;  %v1144_v56 = vmov 2102212464   ;;  %v1145_v58 = vmov 920167782   ;;  %s1147_s0 = smov [#allocation2]  }
   0x5   :  { %v1146_v1 = vmov 1326507024   ;;  %s994_s12 = sshll.u32 %s1147_s0, 4  ;;  %s995_s12 = int_to_ptr.vmem [resolvable:$true] %s994_s12 }
   0x6   :  { %v29_v6 = vsub.s32 0, %v1166_v5  ;;  %v33_v7 = vsub.s32 1, %v1166_v5  ;;  %v37_v9 = vsub.s32 2, %v1166_v5  ;;  %v41_v27 = vsub.s32 3, %v1166_v5  ;;  %s1114_s13 = scalar_lea.vmem %s995_s12, 1024  ;;  %p1119_p1 = scmp.lt.s32.totalorder %s995_s12, %s995_s12 }
   0x7   :  { %p1115_p0 = scmp.ne.s32.totalorder %s995_s12, %s1114_s13  ;;  %p1120_p2 = scmp.lt.s32.totalorder %s1114_s13, %s1114_s13 }
   0x8   :  { %1077 = vset.pattern.permute.xlu0 %v1140_v3  ;;  %v30_v10 = vrot.slane %v1173_v8, %v29_v6  ;;  %v34_v11 = vrot.slane %v1173_v8, %v33_v7  ;;  %v38_v12 = vrot.slane %v1173_v8, %v37_v9  ;;  %v1216_v37 = vrot.slane %v1173_v8, %v41_v27 }
   0x9   :  { %908 = vperm.xlu0 %1077, %v13_v0   ;;  %p1121_p3 = por %p1120_p2, %p1119_p1 }
   0xb   :  { %p1122_p4 = pnand %p1121_p3, %p1115_p0 }
   0xd   :  { %1079 = vset.pattern.permute.xlu0 %v1139_v2  ;;  %v1201_v22 = vpop.eup %1080 }
   0xe   :  { %v1211_v31 = vmul.f32 %v1201_v22, %v1173_v8 }
  0x10   :  { %v16_v39 = vsub.f32 2.0, %v1211_v31  ;;  %v53_v31 = vsub.s32 6, %v1166_v5 }
  0x83   :  { %v1186_v13 = vpop.permute.xlu0 %23 }
  0x84   :  { %v1189_v14 = vmul.f32 %v30_v10, %v1186_v13  ;;  %v1192_v15 = vmul.f32 %v34_v11, %v1186_v13  ;;  %v1195_v16 = vmul.f32 %v38_v12, %v1186_v13 }
  0x86   :  { %v75_v17 = vand.u32 2147483647, %v1189_v14  ;;  %v78_v18 = vand.u32 2139095040, %v1189_v14  ;;  %v179_v19 = vand.u32 2147483647, %v1192_v15  ;;  %v182_v20 = vand.u32 2139095040, %v1192_v15 }
  0x87   :  { %v286_v26 = vand.u32 2139095040, %v1195_v16  ;;  %v283_v45 = vand.u32 2147483647, %v1195_v16 }
  0x88   :  { %v79_v21 = vshrl.u32 %v78_v18, 23  ;;  %v82_v23 = vand.u32 8388607, %v75_v17  ;;  %v183_v24 = vshrl.u32 %v182_v20, 23  ;;  %v186_v25 = vand.u32 8388607, %v179_v19 }
  0x89   :  { %v287_v30 = vshrl.u32 %v286_v26, 23 }
  0x8a   :  { %v1002_v28 = vadd.s32 4294967169, %v79_v21  ;;  %v1006_v29 = vadd.s32 4294967169, %v183_v24  ;;  %v83_v33 = vor.u32 8388608, %v82_v23  ;;  %v187_v34 = vor.u32 8388608, %v186_v25 }
  0x8b   :  { %v1010_v36 = vadd.s32 4294967169, %v287_v30 }
  0x8c   :  { %v85_v32 = vadd.s32 1, %v1002_v28  ;;  %v189_v35 = vadd.s32 1, %v1006_v29  ;;  %v1219_v43 = vshll.u32 %v83_v33, 8  ;;  %v1221_v44 = vshll.u32 %v187_v34, 8 }
  0x8d   :  { %v1224_v46 = vadd.s32 1, %v1010_v36 }
  0x8e   :  { %vm86_vm0 = vcmp.gt.s32.totalorder %v85_v32, 0  ;;  %vm190_vm1 = vcmp.gt.s32.totalorder %v189_v35, 0 }
  0x8f   :  { %v87_v38 = vsel %vm86_vm0, %v85_v32, 0  ;;  %v191_v42 = vsel %vm190_vm1, %v189_v35, 0  ;;  %vm294_vm6 = vcmp.gt.s32.totalorder %v1224_v46, 0 }
  0x90   :  { %v88_v40 = vshrl.u32 %v87_v38, 5  ;;  %v89_v41 = vand.u32 31, %v87_v38  ;;  %v1227_v50 = vshrl.u32 %v191_v42, 5  ;;  %v193_v51 = vand.u32 31, %v191_v42 }
  0x92   :  { %v90_v47 = vsub.s32 32, %v89_v41  ;;  %v92_v49 = vshll.u32 %v1141_v48, %v89_v41  ;;  %v95_v53 = vshll.u32 %v1142_v52, %v89_v41  ;;  %v98_v55 = vshll.u32 %v1143_v54, %v89_v41 }
  0x93   :  { %v101_v57 = vshll.u32 %v1144_v56, %v89_v41  ;;  %v104_v59 = vshll.u32 %v1145_v58, %v89_v41  ;;  %vm107_vm2 = vcmp.lt.s32.totalorder %v88_v40, 1  ;;  %vm108_vm3 = vcmp.lt.s32.totalorder %v88_v40, 2 }
  0x94   :  { %v93_v60 = vshrl.u32 %v1142_v52, %v90_v47  ;;  %v96_v61 = vshrl.u32 %v1143_v54, %v90_v47  ;;  %v99_v62 = vshrl.u32 %v1144_v56, %v90_v47  ;;  %v91_v63 = vshrl.u32 %v1141_v48, %v90_v47 }
  0x95   :  { %v102_v0 = vshrl.u32 %v1145_v58, %v90_v47  ;;  %v105_v2 = vshrl.u32 %v1146_v1, %v90_v47  ;;  %v194_v11 = vsub.s32 32, %v193_v51  ;;  %vm109_vm4 = vcmp.lt.s32.totalorder %v88_v40, 3 }
  0x96   :  { %v94_v3 = vor.u32 %v93_v60, %v92_v49  ;;  %v97_v4 = vor.u32 %v96_v61, %v95_v53  ;;  %v100_v10 = vor.u32 %v99_v62, %v98_v55  ;;  %vm110_vm5 = vcmp.lt.s32.totalorder %v88_v40, 4 }
  0x97   :  { %v103_v12 = vor.u32 %v102_v0, %v101_v57  ;;  %v106_v18 = vor.u32 %v105_v2, %v104_v59  ;;  %v196_v29 = vshll.u32 %v1141_v48, %v193_v51  ;;  %v197_v33 = vshrl.u32 %v1142_v52, %v194_v11 }
  0x98   :  { %v111_v20 = vsel %vm107_vm2, %v91_v63, %v94_v3  ;;  %v112_v21 = vsel %vm110_vm5, %v100_v10, 2102212464  ;;  %v115_v23 = vsel %vm107_vm2, %v94_v3, %v97_v4  ;;  %v119_v24 = vsel %vm107_vm2, %v97_v4, %v100_v10 }
  0x99   :  { %v113_v25 = vsel %vm109_vm4, %v97_v4, %v112_v21  ;;  %v116_v26 = vsel %vm110_vm5, %v103_v12, 920167782  ;;  %v120_v28 = vsel %vm110_vm5, %v106_v18, 1326507024  ;;  %v199_v34 = vshll.u32 %v1142_v52, %v193_v51 }
  0x9a   :  { %v117_v30 = vsel %vm109_vm4, %v100_v10, %v116_v26  ;;  %v121_v32 = vsel %vm109_vm4, %v103_v12, %v120_v28  ;;  %v114_v35 = vsel %vm108_vm3, %v111_v20, %v113_v25  ;;  %v200_v41 = vshrl.u32 %v1143_v54, %v194_v11 }
  0x9b   :  { %v118_v36 = vsel %vm108_vm3, %v115_v23, %v117_v30  ;;  %v122_v38 = vsel %vm108_vm3, %v119_v24, %v121_v32  ;;  %v198_v55 = vor.u32 %v197_v33, %v196_v29  ;;  %v202_v59 = vshll.u32 %v1143_v54, %v193_v51 }
  0x9c   :  { %v1251_v42 = vmul.u32.u64.low %v1219_v43, %v122_v38  ;;  %v1252_v47 = vmul.u32.u64.high %v1219_v43, %v122_v38, %v1251_v42  ;;  %v1255_v49 = vmul.u32.u64.low %v1219_v43, %v118_v36  ;;  %v1256_v53 = vmul.u32.u64.high %v1219_v43, %v118_v36, %v1255_v49 }
  0x9d   :  { %v201_v57 = vor.u32 %v200_v41, %v199_v34  ;;  %v203_v60 = vshrl.u32 %v1144_v56, %v194_v11  ;;  %v195_v40 = vshrl.u32 %v1141_v48, %v194_v11  ;;  %v205_v61 = vshll.u32 %v1144_v56, %v193_v51 }
  0x9e   :  { %v206_v62 = vshrl.u32 %v1145_v58, %v194_v11  ;;  %v209_v63 = vshrl.u32 %v1146_v1, %v194_v11  ;;  %v130_v0 = vmul.u32 %v1219_v43, %v114_v35  ;;  %v208_v3 = vshll.u32 %v1145_v58, %v193_v51 }
  0x9f   :  { %v204_v2 = vor.u32 %v203_v60, %v202_v59  ;;  %vm211_vm7 = vcmp.lt.s32.totalorder %v1227_v50, 1  ;;  %vm132_vm8 = vc.u32 %v1252_v47, %v1255_v49  ;;  %v133_v4 = vadd.s32 1, %v1256_v53 }
  0xa0   :  { %v207_v10 = vor.u32 %v206_v62, %v205_v61  ;;  %vm212_vm9 = vcmp.lt.s32.totalorder %v1227_v50, 2  ;;  %v210_v12 = vor.u32 %v209_v63, %v208_v3  ;;  %vm213_vm10 = vcmp.lt.s32.totalorder %v1227_v50, 3 }
  0xa1   :  { %vm214_vm11 = vcmp.lt.s32.totalorder %v1227_v50, 4  ;;  %v219_v11 = vsel %vm211_vm7, %v198_v55, %v201_v57  ;;  %v134_v43 = vsel %vm132_vm8, %v133_v4, %v1256_v53  ;;  %v223_v20 = vsel %vm211_vm7, %v201_v57, %v204_v2 }
  0xa2   :  { %v216_v18 = vsel %vm214_vm11, %v204_v2, 2102212464  ;;  %v220_v51 = vsel %vm214_vm11, %v207_v10, 920167782  ;;  %v135_v21 = vadd.s32 %v134_v43, %v130_v0  ;;  %v215_v23 = vsel %vm211_vm7, %v195_v40, %v198_v55 }
  0xa3   :  { %v221_v24 = vsel %vm213_vm10, %v204_v2, %v220_v51  ;;  %v224_v25 = vsel %vm214_vm11, %v210_v12, 1326507024  ;;  %v217_v26 = vsel %vm213_vm10, %v201_v57, %v216_v18  ;;  %v295_v30 = vsel %vm294_vm6, %v1224_v46, 0 }
  0xa4   :  { %v222_v28 = vsel %vm212_vm9, %v219_v11, %v221_v24  ;;  %v225_v29 = vsel %vm213_vm10, %v207_v10, %v224_v25  ;;  %v136_v32 = vadd.s32 536870912, %v135_v21  ;;  %v1289_v36 = vmul.f32 %v1216_v37, %v1186_v13 }
  0xa5   :  { %v226_v33 = vsel %vm212_vm9, %v223_v20, %v225_v29  ;;  %v1283_v34 = vmul.u32.u64.low %v1221_v44, %v222_v28  ;;  %v1284_v35 = vmul.u32.u64.high %v1221_v44, %v222_v28, %v1283_v34  ;;  %v218_v46 = vsel %vm212_vm9, %v215_v23, %v217_v26 }
  0xa6   :  { %v1292_v38 = vmul.u32.u64.low %v1221_v44, %v226_v33  ;;  %v1293_v41 = vmul.u32.u64.high %v1221_v44, %v226_v33, %v1292_v38  ;;  %v1295_v42 = vshrl.u32 %v136_v32, 30  ;;  %v297_v53 = vand.u32 31, %v295_v30 }
  0xa7   :  { %v1302_v55 = vmul.f32 %v1201_v22, %v16_v39  ;;  %v45_v57 = vsub.s32 4, %v1166_v5  ;;  %v237_v59 = vadd.s32 1, %v1284_v35  ;;  %v290_v60 = vand.u32 8388607, %v283_v45 }
  0xa8   :  { %v138_v37 = vshll.u32 %v1295_v42, 30  ;;  %v298_v40 = vsub.s32 32, %v297_v53  ;;  %v49_v61 = vsub.s32 5, %v1166_v5  ;;  %v234_v50 = vmul.u32 %v1221_v44, %v218_v46 }
  0xa9   :  { %vm236_vm12 = vc.u32 %v1293_v41, %v1283_v34  ;;  %v390_v22 = vand.u32 2139095040, %v1289_v36  ;;  %v2067_v39 = vsub.s32 7, %v1166_v5  ;;  %v1321_v0 = vmul.f32 %v1302_v55, %v1173_v8 }
  0xaa   :  { %v1316_v62 = vsub.s32 %v135_v21, %v138_v37  ;;  %v238_v63 = vsel %vm236_vm12, %v237_v59, %v1284_v35  ;;  %v1326_v44 = vrot.slane %v1173_v8, %v45_v57  ;;  %v301_v3 = vshrl.u32 %v1142_v52, %v298_v40 }
  0xab   :  { %v239_v2 = vadd.s32 %v238_v63, %v234_v50  ;;  %v291_v10 = vor.u32 8388608, %v290_v60  ;;  %v304_v12 = vshrl.u32 %v1143_v54, %v298_v40  ;;  %v307_v11 = vshrl.u32 %v1144_v56, %v298_v40 }
  0xac   :  { %v141_v4 = vsub.s32 0, %v1316_v62  ;;  %v1332_v18 = vshrl.u32 %v295_v30, 5  ;;  %v300_v51 = vshll.u32 %v1141_v48, %v297_v53  ;;  %v391_v20 = vshrl.u32 %v390_v22, 23 }
  0xad   :  { %v240_v43 = vadd.s32 536870912, %v239_v2  ;;  %v303_v23 = vshll.u32 %v1142_v52, %v297_v53  ;;  %v306_v24 = vshll.u32 %v1143_v54, %v297_v53  ;;  %v310_v25 = vshrl.u32 %v1145_v58, %v298_v40 }
  0xae   :  { %v1003_v21 = vmin.u32 %v141_v4, %v1316_v62  ;;  %v302_v28 = vor.u32 %v301_v3, %v300_v51  ;;  %v309_v29 = vshll.u32 %v1144_v56, %v297_v53  ;;  %v313_v32 = vshrl.u32 %v1146_v1, %v298_v40 }
  0xaf   :  { %v1339_v26 = vshrl.u32 %v240_v43, 30  ;;  %v305_v33 = vor.u32 %v304_v12, %v303_v23  ;;  %v308_v35 = vor.u32 %v307_v11, %v306_v24  ;;  %v312_v38 = vshll.u32 %v1145_v58, %v297_v53 }
  0xb0   :  { %v143_v30 = vclz %v1003_v21  ;;  %v131_v46 = vadd.s32 %v1255_v49, %v1252_v47  ;;  %v311_v59 = vor.u32 %v310_v25, %v309_v29  ;;  %v1347_v60 = vshll.u32 %v291_v10, 8 }
  0xb1   :  { %v242_v37 = vshll.u32 %v1339_v26, 30  ;;  %v314_v22 = vor.u32 %v313_v32, %v312_v38  ;;  %vm318_vm13 = vcmp.lt.s32.totalorder %v1332_v18, 4  ;;  %v1014_v63 = vadd.s32 4294967169, %v391_v20 }
  0xb2   :  { %v1004_v50 = vadd.s32 4294967294, %v143_v30  ;;  %vm315_vm14 = vcmp.lt.s32.totalorder %v1332_v18, 1  ;;  %vm317_vm15 = vcmp.lt.s32.totalorder %v1332_v18, 3  ;;  %v324_v53 = vsel %vm318_vm13, %v311_v59, 920167782 }
  0xb3   :  { %v1350_v3 = vsub.s32 %v239_v2, %v242_v37  ;;  %vm316_vm1 = vcmp.lt.s32.totalorder %v1332_v18, 2  ;;  %v323_v47 = vsel %vm315_vm14, %v302_v28, %v305_v33  ;;  %v325_v49 = vsel %vm317_vm15, %v308_v35, %v324_v53 }
  0xb4   :  { %vm1005_vm0 = vcmp.lt.s32.totalorder %v1004_v50, 0  ;;  %v299_v10 = vshrl.u32 %v1141_v48, %v298_v40  ;;  %v327_v12 = vsel %vm315_vm14, %v305_v33, %v308_v35  ;;  %v320_v51 = vsel %vm318_vm13, %v308_v35, 2102212464 }
  0xb5   :  { %v146_v4 = vsel %vm1005_vm0, 0, %v1004_v50  ;;  %v245_v2 = vsub.s32 0, %v1350_v3  ;;  %v328_v20 = vsel %vm318_vm13, %v314_v22, 1326507024  ;;  %v326_v24 = vsel %vm316_vm1, %v323_v47, %v325_v49 }
  0xb6   :  { %v147_v11 = vsub.s32 32, %v146_v4  ;;  %v151_v43 = vsub.s32 4294967266, %v146_v4  ;;  %v148_v21 = vshll.u32 %v1316_v62, %v146_v4  ;;  %v329_v40 = vsel %vm317_vm15, %v311_v59, %v328_v20 }
  0xb7   :  { %v1007_v23 = vmin.u32 %v245_v2, %v1350_v3  ;;  %v330_v32 = vsel %vm316_vm1, %v327_v12, %v329_v40  ;;  %v397_v30 = vadd.s32 1, %v1014_v63  ;;  %v319_v38 = vsel %vm315_vm14, %v299_v10, %v302_v28 }
  0xb8   :  { %v149_v25 = vshrl.u32 %v131_v46, %v147_v11  ;;  %v152_v29 = vadd.s32 127, %v151_v43  ;;  %v321_v62 = vsel %vm317_vm15, %v305_v33, %v320_v51  ;;  %v387_v37 = vand.u32 2147483647, %v1289_v36 }
  0xb9   :  { %v247_v35 = vclz %v1007_v23  ;;  %v1383_v53 = vmul.u32.u64.low %v1347_v60, %v330_v32  ;;  %v1384_v59 = vmul.u32.u64.high %v1347_v60, %v330_v32, %v1383_v53  ;;  %vm398_vm2 = vcmp.gt.s32.totalorder %v397_v30, 0 }
  0xba   :  { %v150_v50 = vor.u32 %v149_v25, %v148_v21  ;;  %v153_v22 = vshll.u32 %v152_v29, 23  ;;  %v1387_v47 = vmul.u32.u64.low %v1347_v60, %v326_v24  ;;  %v1388_v49 = vmul.u32.u64.high %v1347_v60, %v326_v24, %v1387_v47 }
  0xbb   :  { %v1008_v46 = vadd.s32 4294967294, %v247_v35  ;;  %v19_v28 = vsub.f32 2.0, %v1321_v0  ;;  %v1395_v33 = vrot.slane %v1173_v8, %v49_v61  ;;  %v399_v4 = vsel %vm398_vm2, %v397_v30, 0 }
  0xbc   :  { %v154_v63 = vor.u32 4788187, %v153_v22  ;;  %v161_v2 = vsub.s32 4, %v1295_v42  ;;  %v322_v10 = vsel %vm316_vm1, %v319_v38, %v321_v62  ;;  %v401_v12 = vand.u32 31, %v399_v4 }
  0xbd   :  { %vm1009_vm3 = vcmp.lt.s32.totalorder %v1008_v46, 0  ;;  %v1403_v11 = vrot.slane %v1173_v8, %v53_v31  ;;  %vm340_vm4 = vc.u32 %v1384_v59, %v1387_v47  ;;  %v157_v51 = vcvt.s32.f32 %v150_v50 }
  0xbe   :  { %v155_v0 = vand.u32 2147483647, %v154_v63  ;;  %v250_v43 = vsel %vm1009_vm3, 0, %v1008_v46  ;;  %v341_v21 = vadd.s32 1, %v1388_v49  ;;  %v394_v23 = vand.u32 8388607, %v387_v37 }
  0xbf   :  { %v255_v20 = vsub.s32 4294967266, %v250_v43  ;;  %v1413_v18 = vrot.slane %v1173_v8, %v2067_v39  ;;  %vm77_vm5 = vcmp.lt.s32.totalorder %v1189_v14, 0  ;;  %v338_v24 = vmul.u32 %v1347_v60, %v322_v10 }
  0xc0   :  { %v402_v40 = vsub.s32 32, %v401_v12  ;;  %v1418_v25 = vmul.f32 %v19_v28, %v1302_v55  ;;  %v158_v29 = vmul.f32 %v157_v51, %v155_v0  ;;  %v162_v32 = vsel %vm77_vm5, %v161_v2, %v1295_v42 }
  0xc1   :  { %v342_v30 = vsel %vm340_vm4, %v341_v21, %v1388_v49  ;;  %v1426_v35 = vmul.f32 %v1326_v44, %v1186_v13  ;;  %vm1430_vm6 = vcmp.le.f32.partialorder %v75_v17, 0.7853982  ;;  %v256_v60 = vadd.s32 127, %v255_v20 }
  0xc2   :  { %v343_v55 = vadd.s32 %v342_v30, %v338_v24  ;;  %v235_v38 = vadd.s32 %v1283_v34, %v1293_v41  ;;  %v395_v62 = vor.u32 8388608, %v394_v23  ;;  %v405_v42 = vshrl.u32 %v1142_v52, %v402_v40 }
  0xc3   :  { %v408_v50 = vshrl.u32 %v1143_v54, %v402_v40  ;;  %v164_v44 = vsel %vm1430_vm6, 0, %v162_v32  ;;  %v251_v22 = vsub.s32 32, %v250_v43  ;;  %v1440_v46 = vshrl.u32 %v399_v4, 5 }
  0xc4   :  { %v344_v53 = vadd.s32 536870912, %v343_v55  ;;  %v159_v17 = vxor.u32 2147483648, %v158_v29  ;;  %v404_v49 = vshll.u32 %v1141_v48, %v401_v12  ;;  %v407_v28 = vshll.u32 %v1142_v52, %v401_v12 }
  0xc5   :  { %v411_v63 = vshrl.u32 %v1144_v56, %v402_v40  ;;  %v257_v34 = vshll.u32 %v256_v60, 23  ;;  %v413_v2 = vshll.u32 %v1144_v56, %v401_v12  ;;  %v414_v10 = vshrl.u32 %v1145_v58, %v402_v40 }
  0xc6   :  { %v1445_v41 = vshrl.u32 %v344_v53, 30  ;;  %v406_v0 = vor.u32 %v405_v42, %v404_v49  ;;  %v409_v51 = vor.u32 %v408_v50, %v407_v28  ;;  %v410_v20 = vshll.u32 %v1143_v54, %v401_v12 }
  0xc7   :  { %v417_v4 = vshrl.u32 %v1146_v1, %v402_v40  ;;  %v168_v21 = vadd.s32 3, %v164_v44  ;;  %vm181_vm7 = vcmp.lt.s32.totalorder %v1192_v15, 0  ;;  %v253_v23 = vshrl.u32 %v235_v38, %v251_v22 }
  0xc8   :  { %v346_v24 = vshll.u32 %v1445_v41, 30  ;;  %v415_v32 = vor.u32 %v414_v10, %v413_v2  ;;  %v252_v30 = vshll.u32 %v1350_v3, %v250_v43  ;;  %v265_v60 = vsub.s32 4, %v1339_v26 }
  0xc9   :  { %v412_v53 = vor.u32 %v411_v63, %v410_v20  ;;  %v416_v39 = vshll.u32 %v1145_v58, %v401_v12  ;;  %v160_v42 = vsel %vm77_vm5, %v159_v17, %v158_v29  ;;  %v258_v50 = vor.u32 4788187, %v257_v34 }
  0xca   :  { %v1458_v49 = vsub.s32 %v343_v55, %v346_v24  ;;  %vm419_vm8 = vcmp.lt.s32.totalorder %v1440_v46, 1  ;;  %vm422_vm9 = vcmp.lt.s32.totalorder %v1440_v46, 4  ;;  %v435_v3 = vshll.u32 %v395_v62, 8 }
  0xcb   :  { %v418_v44 = vor.u32 %v417_v4, %v416_v39  ;;  %v427_v38 = vsel %vm419_vm8, %v406_v0, %v409_v51  ;;  %v254_v43 = vor.u32 %v253_v23, %v252_v30  ;;  %vm421_vm10 = vcmp.lt.s32.totalorder %v1440_v46, 3 }
  0xcc   :  { %v349_v22 = vsub.s32 0, %v1458_v49  ;;  %v428_v12 = vsel %vm422_vm9, %v415_v32, 920167782  ;;  %v163_v29 = vsel %vm1430_vm6, %v1189_v14, %v160_v42  ;;  %vm285_vm11 = vcmp.lt.s32.totalorder %v1195_v16, 0 }
  0xcd   :  { %v403_v39 = vshrl.u32 %v1141_v48, %v402_v40  ;;  %vm420_vm12 = vcmp.lt.s32.totalorder %v1440_v46, 2  ;;  %v429_v55 = vsel %vm421_vm10, %v412_v53, %v428_v12  ;;  %v259_v62 = vand.u32 2147483647, %v258_v50 }
  0xce   :  { %v1011_v17 = vmin.u32 %v349_v22, %v1458_v49  ;;  %v424_v28 = vsel %vm422_vm9, %v412_v53, 2102212464  ;;  %v430_v63 = vsel %vm420_vm12, %v427_v38, %v429_v55  ;;  %v431_v8 = vsel %vm419_vm8, %v409_v51, %v412_v53 }
  0xcf   :  { %v432_v40 = vsel %vm422_vm9, %v418_v44, 1326507024  ;;  %v1485_v34 = vmul.u32.u64.low %v435_v3, %v430_v63  ;;  %v1486_v2 = vmul.u32.u64.high %v435_v3, %v430_v63, %v1485_v34  ;;  %1082 = vcosq.f32 %v163_v29 }
  0xd0   :  { %vm1491_vm13 = vcmp.le.f32.partialorder %v179_v19, 0.7853982  ;;  %v261_v20 = vcvt.s32.f32 %v254_v43  ;;  %v351_v4 = vclz %v1011_v17  ;;  %v266_v23 = vsel %vm181_vm7, %v265_v60, %v1339_v26 }
  0xd1   :  { %v423_v24 = vsel %vm419_vm8, %v403_v39, %v406_v0  ;;  %v425_v30 = vsel %vm421_vm10, %v409_v51, %v424_v28  ;;  %v433_v53 = vsel %vm421_vm10, %v415_v32, %v432_v40  ;;  %v369_v50 = vsub.s32 4, %v1445_v41 }
  0xd2   :  { %v262_v42 = vmul.f32 %v261_v20, %v259_v62  ;;  %v1012_v19 = vadd.s32 4294967294, %v351_v4  ;;  %v434_v44 = vsel %vm420_vm12, %v431_v8, %v433_v53  ;;  %v1507_v38 = vand.u32 3, %v168_v21 }
  0xd3   :  { %vm1511_vm14 = vcmp.le.f32.partialorder %v283_v45, 0.7853982  ;;  %v1515_v0 = vmul.u32.u64.low %v435_v3, %v434_v44  ;;  %v1516_v51 = vmul.u32.u64.high %v435_v3, %v434_v44, %v1515_v0  ;;  %1084 = vsinq.f32 %v163_v29 }
  0xd4   :  { %vm1013_vm15 = vcmp.lt.s32.totalorder %v1012_v19, 0  ;;  %v426_v32 = vsel %vm420_vm12, %v423_v24, %v425_v30  ;;  %v445_v60 = vadd.s32 1, %v1486_v2  ;;  %v268_v21 = vsel %vm1491_vm13, 0, %v266_v23 }
  0xd5   :  { %v339_v43 = vadd.s32 %v1387_v47, %v1384_v59  ;;  %v354_v45 = vsel %vm1013_vm15, 0, %v1012_v19  ;;  %v494_v22 = vand.u32 2139095040, %v1426_v35  ;;  %v263_v12 = vxor.u32 2147483648, %v262_v42 }
  0xd6   :  { %v355_v39 = vsub.s32 32, %v354_v45  ;;  %v359_v55 = vsub.s32 4294967266, %v354_v45  ;;  %v370_v29 = vsel %vm285_vm11, %v369_v50, %v1445_v41  ;;  %v442_v46 = vmul.u32 %v435_v3, %v426_v32 }
  0xd7   :  { %vm444_vm0 = vc.u32 %v1516_v51, %v1485_v34  ;;  %v491_v62 = vand.u32 2147483647, %v1426_v35  ;;  %v495_v17 = vshrl.u32 %v494_v22, 23  ;;  %v356_v28 = vshll.u32 %v1458_v49, %v354_v45 }
  0xd8   :  { %v357_v59 = vshrl.u32 %v339_v43, %v355_v39  ;;  %v360_v47 = vadd.s32 127, %v359_v55  ;;  %v446_v63 = vsel %vm444_vm0, %v445_v60, %v1486_v2  ;;  %v1536_v8 = vmul.f32 %v1395_v33, %v1186_v13 }
  0xd9   :  { %v372_v41 = vsel %vm1511_vm14, 0, %v370_v29  ;;  %v447_v3 = vadd.s32 %v446_v63, %v442_v46  ;;  %v1018_v40 = vadd.s32 4294967169, %v495_v17  ;;  %v1540_v20 = vpop.eup %1082  ;;  %v1544_v4 = vmul.f32 %v1403_v11, %v1186_v13 }
  0xda   :  { %v264_v49 = vsel %vm181_vm7, %v263_v12, %v262_v42  ;;  %v358_v23 = vor.u32 %v357_v59, %v356_v28  ;;  %v361_v2 = vshll.u32 %v360_v47, 23  ;;  %v272_v24 = vadd.s32 3, %v268_v21 }
  0xdb   :  { %v448_v30 = vadd.s32 536870912, %v447_v3  ;;  %v498_v33 = vand.u32 8388607, %v491_v62  ;;  %v501_v53 = vadd.s32 1, %v1018_v40  ;;  %v1552_v19 = vmul.f32 %v1413_v18, %v1186_v13 }
  0xdc   :  { %vm174_vm1 = vcmp.eq.s32.totalorder %v1507_v38, 2  ;;  %v362_v50 = vor.u32 4788187, %v361_v2  ;;  %v376_v11 = vadd.s32 3, %v372_v41  ;;  %v175_v44 = vxor.u32 2147483648, %v1540_v20 }
  0xdd   :  { %v267_v42 = vsel %vm1491_vm13, %v1192_v15, %v264_v49  ;;  %v1559_v0 = vshrl.u32 %v448_v30, 30  ;;  %vm502_vm2 = vcmp.gt.s32.totalorder %v501_v53, 0  ;;  %v1561_v32 = vpop.eup %1084  ;;  %v365_v21 = vcvt.s32.f32 %v358_v23 }
  0xde   :  { %v363_v60 = vand.u32 2147483647, %v362_v50  ;;  %v503_v43 = vsel %vm502_vm2, %v501_v53, 0  ;;  %v598_v13 = vand.u32 2139095040, %v1536_v8  ;;  %v1564_v18 = vand.u32 3, %v272_v24 }
  0xdf   :  { %v450_v45 = vshll.u32 %v1559_v0, 30  ;;  %v499_v22 = vor.u32 8388608, %v498_v33  ;;  %v595_v12 = vand.u32 2147483647, %v1536_v8  ;;  %1086 = vcosq.f32 %v267_v42 }
  0xe0   :  { %v366_v10 = vmul.f32 %v365_v21, %v363_v60  ;;  %v1568_v39 = vand.u32 3, %v376_v11  ;;  %v505_v55 = vand.u32 31, %v503_v43  ;;  %v172_v29 = vxor.u32 2147483648, %v1561_v32 }
  0xe1   :  { %v1574_v46 = vsel %vm174_vm1, %v175_v44, %v1561_v32  ;;  %1088 = vsinq.f32 %v267_v42  ;;  %v1576_v17 = vsub.s32 %v447_v3, %v450_v45  ;;  %v1578_v59 = vshrl.u32 %v503_v43, 5 }
  0xe2   :  { %v367_v28 = vxor.u32 2147483648, %v366_v10  ;;  %v506_v47 = vsub.s32 32, %v505_v55  ;;  %v599_v63 = vshrl.u32 %v598_v13, 23  ;;  %v443_v41 = vadd.s32 %v1485_v34, %v1516_v51 }
  0xe3   :  { %v453_v40 = vsub.s32 0, %v1576_v17  ;;  %v1583_v49 = vshll.u32 %v499_v22, 8  ;;  %v1587_v23 = vand.u32 8388607, %v595_v12  ;;  %v473_v2 = vsub.s32 4, %v1559_v0 }
  0xe4   :  { %v368_v3 = vsel %vm285_vm11, %v367_v28, %v366_v10  ;;  %v509_v24 = vshrl.u32 %v1142_v52, %v506_v47  ;;  %v512_v30 = vshrl.u32 %v1143_v54, %v506_v47  ;;  %v508_v34 = vshll.u32 %v1141_v48, %v505_v55 }
  0xe5   :  { %v1015_v33 = vmin.u32 %v453_v40, %v1576_v17  ;;  %v511_v51 = vshll.u32 %v1142_v52, %v505_v55  ;;  %v515_v53 = vshrl.u32 %v1144_v56, %v506_v47  ;;  %v514_v50 = vshll.u32 %v1143_v54, %v505_v55 }
  0xe6   :  { %vm523_vm3 = vcmp.lt.s32.totalorder %v1578_v59, 1  ;;  %vm524_vm4 = vcmp.lt.s32.totalorder %v1578_v59, 2  ;;  %v1022_v11 = vadd.s32 4294967169, %v599_v63  ;;  %v371_v44 = vsel %vm1511_vm14, %v1195_v16, %v368_v3 }
  0xe7   :  { %vm389_vm5 = vcmp.lt.s32.totalorder %v1289_v36, 0  ;;  %v455_v42 = vclz %v1015_v33  ;;  %v510_v60 = vor.u32 %v509_v24, %v508_v34  ;;  %v513_v21 = vor.u32 %v512_v30, %v511_v51 }
  0xe8   :  { %v507_v43 = vshrl.u32 %v1141_v48, %v506_v47  ;;  %v516_v13 = vor.u32 %v515_v53, %v514_v50  ;;  %v517_v45 = vshll.u32 %v1144_v56, %v505_v55  ;;  %v518_v22 = vshrl.u32 %v1145_v58, %v506_v47 }
  0xe9   :  { %vm171_vm6 = vcmp.eq.s32.totalorder %v1507_v38, 0  ;;  %v1016_v10 = vadd.s32 4294967294, %v455_v42  ;;  %v520_v28 = vshll.u32 %v1145_v58, %v505_v55  ;;  %v521_v26 = vshrl.u32 %v1146_v1, %v506_v47  ;;  %v1612_v63 = vpop.eup %1086 }
  0xea   :  { %vm526_vm7 = vcmp.lt.s32.totalorder %v1578_v59, 4  ;;  %1090 = vcosq.f32 %v371_v44  ;;  %v519_v40 = vor.u32 %v518_v22, %v517_v45  ;;  %vm525_vm8 = vcmp.lt.s32.totalorder %v1578_v59, 3 }
  0xeb   :  { %v528_v3 = vsel %vm526_vm7, %v516_v13, 2102212464  ;;  %v1617_v24 = vpop.eup %1088  ;;  %vm1621_vm9 = vcmp.le.f32.partialorder %v387_v37, 0.7853982  ;;  %vm1017_vm10 = vcmp.lt.s32.totalorder %v1016_v10, 0  ;;  %v522_v55 = vor.u32 %v521_v26, %v520_v28 }
  0xec   :  { %v527_v47 = vsel %vm523_vm3, %v507_v43, %v510_v60  ;;  %v531_v33 = vsel %vm523_vm3, %v510_v60, %v513_v21  ;;  %v458_v34 = vsel %vm1017_vm10, 0, %v1016_v10  ;;  %v529_v51 = vsel %vm525_vm8, %v513_v21, %v528_v3 }
  0xed   :  { %v532_v53 = vsel %vm526_vm7, %v519_v40, 920167782  ;;  %v605_v50 = vadd.s32 1, %v1022_v11  ;;  %v459_v37 = vsub.s32 32, %v458_v34  ;;  %v463_v42 = vsub.s32 4294967266, %v458_v34 }
  0xee   :  { %v533_v45 = vsel %vm525_vm8, %v516_v13, %v532_v53  ;;  %v535_v22 = vsel %vm523_vm3, %v513_v21, %v516_v13  ;;  %v460_v43 = vshll.u32 %v1576_v17, %v458_v34  ;;  %v536_v10 = vsel %vm526_vm7, %v522_v55, 1326507024 }
  0xef   :  { %v534_v60 = vsel %vm524_vm4, %v531_v33, %v533_v45  ;;  %vm606_vm11 = vcmp.gt.s32.totalorder %v605_v50, 0  ;;  %v461_v28 = vshrl.u32 %v443_v41, %v459_v37  ;;  %v464_v26 = vadd.s32 127, %v463_v42 }
  0xf0   :  { %v537_v11 = vsel %vm525_vm8, %v519_v40, %v536_v10  ;;  %v607_v3 = vsel %vm606_vm11, %v605_v50, 0  ;;  %v474_v53 = vsel %vm389_vm5, %v473_v2, %v1559_v0  ;;  %v530_v41 = vsel %vm524_vm4, %v527_v47, %v529_v51 }
  0xf1   :  { %v538_v17 = vsel %vm524_vm4, %v535_v22, %v537_v11  ;;  %v1650_v21 = vmul.u32.u64.low %v1583_v49, %v534_v60  ;;  %v1651_v13 = vmul.u32.u64.high %v1583_v49, %v534_v60, %v1650_v21  ;;  %v462_v55 = vor.u32 %v461_v28, %v460_v43 }
  0xf2   :  { %v465_v33 = vshll.u32 %v464_v26, 23  ;;  %v609_v34 = vand.u32 31, %v607_v3  ;;  %v1661_v0 = vsel %vm171_vm6, %v1540_v20, %v172_v29  ;;  %v279_v2 = vxor.u32 2147483648, %v1612_v63 }
  0xf3   :  { %v1665_v40 = vmul.u32.u64.low %v1583_v49, %v538_v17  ;;  %v1666_v50 = vmul.u32.u64.high %v1583_v49, %v538_v17, %v1665_v40  ;;  %v276_v37 = vxor.u32 2147483648, %v1617_v24  ;;  %v603_v59 = vor.u32 8388608, %v1587_v23 }
  0xf4   :  { %v466_v42 = vor.u32 4788187, %v465_v33  ;;  %v610_v47 = vsub.s32 32, %v609_v34  ;;  %v1670_v51 = vpop.eup %1090  ;;  %1092 = vsinq.f32 %v371_v44  ;;  %v476_v32 = vsel %vm1621_vm9, 0, %v474_v53 }
  0xf5   :  { %v546_v20 = vmul.u32 %v1583_v49, %v530_v41  ;;  %v549_v29 = vadd.s32 1, %v1651_v13  ;;  %v469_v22 = vcvt.s32.f32 %v462_v55  ;;  %v612_v43 = vshll.u32 %v1141_v48, %v609_v34 }
  0xf6   :  { %v467_v45 = vand.u32 2147483647, %v466_v42  ;;  %v613_v60 = vshrl.u32 %v1142_v52, %v610_v47  ;;  %vm548_vm12 = vc.u32 %v1666_v50, %v1650_v21  ;;  %v1680_v23 = vshrl.u32 %v607_v3, 5 }
  0xf7   :  { %v615_v44 = vshll.u32 %v1142_v52, %v609_v34  ;;  %v616_v10 = vshrl.u32 %v1143_v54, %v610_v47  ;;  %v550_v49 = vsel %vm548_vm12, %v549_v29, %v1651_v13  ;;  %v618_v11 = vshll.u32 %v1143_v54, %v609_v34 }
  0xf8   :  { %v470_v28 = vmul.f32 %v469_v22, %v467_v45  ;;  %v614_v26 = vor.u32 %v613_v60, %v612_v43  ;;  %v551_v53 = vadd.s32 %v550_v49, %v546_v20  ;;  %v619_v55 = vshrl.u32 %v1144_v56, %v610_v47 }
  0xf9   :  { %v617_v17 = vor.u32 %v616_v10, %v615_v44  ;;  %v621_v33 = vshll.u32 %v1144_v56, %v609_v34  ;;  %v622_v3 = vshrl.u32 %v1145_v58, %v610_v47  ;;  %v624_v40 = vshll.u32 %v1145_v58, %v609_v34 }
  0xfa   :  { %v471_v41 = vxor.u32 2147483648, %v470_v28  ;;  %v625_v42 = vshrl.u32 %v1146_v1, %v610_v47  ;;  %vm170_vm13 = vcmp.lt.s32.totalorder %v1507_v38, 2  ;;  %v383_v13 = vxor.u32 2147483648, %v1670_v51 }
  0xfb   :  { %v480_v29 = vadd.s32 3, %v476_v32  ;;  %v552_v45 = vadd.s32 536870912, %v551_v53  ;;  %v620_v22 = vor.u32 %v619_v55, %v618_v11  ;;  %v623_v43 = vor.u32 %v622_v3, %v621_v33 }
  0xfc   :  { %v472_v20 = vsel %vm389_vm5, %v471_v41, %v470_v28  ;;  %v626_v60 = vor.u32 %v625_v42, %v624_v40  ;;  %vm627_vm14 = vcmp.lt.s32.totalorder %v1680_v23, 1  ;;  %vm275_vm15 = vcmp.eq.s32.totalorder %v1564_v18, 0 }
  0xfd   :  { %vm278_vm0 = vcmp.eq.s32.totalorder %v1564_v18, 2  ;;  %v475_v34 = vsel %vm1621_vm9, %v1289_v36, %v472_v20  ;;  %v553_v44 = vshrl.u32 %v552_v45, 30  ;;  %v611_v32 = vshrl.u32 %v1141_v48, %v610_v47 }
  0xfe   :  { %vm630_vm1 = vcmp.lt.s32.totalorder %v1680_v23, 4  ;;  %vm167_vm2 = vweird.f32 %v1189_v14  ;;  %vm379_vm3 = vcmp.eq.s32.totalorder %v1568_v39, 0  ;;  %vm382_vm4 = vcmp.eq.s32.totalorder %v1568_v39, 2  ;;  %v1093_v28 = vpop.eup %1092 }
  0xff   :  { %vm628_vm5 = vcmp.lt.s32.totalorder %v1680_v23, 2  ;;  %vm629_vm6 = vcmp.lt.s32.totalorder %v1680_v23, 3  ;;  %v635_v10 = vsel %vm627_vm14, %v614_v26, %v617_v17  ;;  %v636_v30 = vsel %vm630_vm1, %v623_v43, 920167782 }
 0x100   :  { %1094 = vcosq.f32 %v475_v34  ;;  %v554_v47 = vshll.u32 %v553_v44, 30  ;;  %v631_v49 = vsel %vm627_vm14, %v611_v32, %v614_v26  ;;  %v632_v11 = vsel %vm630_vm1, %v620_v22, 2102212464 }
 0x101   :  { %vm274_vm7 = vcmp.lt.s32.totalorder %v1564_v18, 2  ;;  %v637_v55 = vsel %vm629_vm6, %v620_v22, %v636_v30  ;;  %v639_v33 = vsel %vm627_vm14, %v617_v17, %v620_v22  ;;  %v640_v41 = vsel %vm630_vm1, %v626_v60, 1326507024 }
 0x102   :  { %v643_v3 = vshll.u32 %v603_v59, 8  ;;  %1096 = vsinq.f32 %v475_v34  ;;  %v1723_v40 = vsub.s32 %v551_v53, %v554_v47  ;;  %v638_v26 = vsel %vm628_vm5, %v635_v10, %v637_v55 }
 0x103   :  { %v641_v42 = vsel %vm629_vm6, %v623_v43, %v640_v41  ;;  %vm378_vm8 = vcmp.lt.s32.totalorder %v1568_v39, 2  ;;  %v633_v45 = vsel %vm629_vm6, %v617_v17, %v632_v11  ;;  %v380_v59 = vxor.u32 2147483648, %v1093_v28 }
 0x104   :  { %v642_v22 = vsel %vm628_vm5, %v639_v33, %v641_v42  ;;  %v1734_v20 = vmul.u32.u64.low %v643_v3, %v638_v26  ;;  %v1735_v60 = vmul.u32.u64.high %v643_v3, %v638_v26, %v1734_v20  ;;  %v557_v53 = vsub.s32 0, %v1723_v40 }
 0x105   :  { %v1739_v34 = vmul.u32.u64.low %v643_v3, %v642_v22  ;;  %v1740_v32 = vmul.u32.u64.high %v643_v3, %v642_v22, %v1739_v34  ;;  %v177_v43 = vsel %vm170_vm13, %v1661_v0, %v1574_v46  ;;  %vm1748_vm9 = vcmp.le.f32.partialorder %v491_v62, 0.7853982 }
 0x106   :  { %vm493_vm10 = vcmp.lt.s32.totalorder %v1426_v35, 0  ;;  %v577_v10 = vsub.s32 4, %v553_v44  ;;  %v1019_v30 = vmin.u32 %v557_v53, %v1723_v40  ;;  %v634_v47 = vsel %vm628_vm5, %v631_v49, %v633_v45 }
 0x107   :  { %v699_v11 = vand.u32 2147483647, %v1544_v4  ;;  %v702_v55 = vand.u32 2139095040, %v1544_v4  ;;  %v277_v38 = vsel %vm275_vm15, %v1612_v63, %v276_v37  ;;  %v280_v62 = vsel %vm278_vm0, %v279_v2, %v1617_v24 }
 0x108   :  { %v1768_v46 = vand.u32 3, %v480_v29  ;;  %v653_v0 = vadd.s32 1, %v1735_v60  ;;  %v1773_v23 = vsel %vm167_vm2, nan, %v177_v43  ;;  %v381_v49 = vsel %vm379_vm3, %v1670_v51, %v380_v59 }
 0x109   :  { %v384_v37 = vsel %vm382_vm4, %v383_v13, %v1093_v28  ;;  %v559_v33 = vclz %v1019_v30  ;;  %v578_v63 = vsel %vm493_vm10, %v577_v10, %v553_v44  ;;  %v650_v24 = vmul.u32 %v643_v3, %v634_v47 }
 0x10a   :  { %vm652_vm11 = vc.u32 %v1740_v32, %v1734_v20  ;;  %v703_v2 = vshrl.u32 %v702_v55, 23  ;;  %v1095_v29 = vpop.eup %1094  ;;  %v1786_v14 = vsel %vm274_vm7, %v277_v38, %v280_v62  ;;  %v706_v13 = vand.u32 8388607, %v699_v11 }
 0x10b   :  { %v1020_v41 = vadd.s32 4294967294, %v559_v33  ;;  %v654_v51 = vsel %vm652_vm11, %v653_v0, %v1735_v60  ;;  %vm483_vm12 = vcmp.eq.s32.totalorder %v1768_v46, 0  ;;  %vm486_vm13 = vcmp.eq.s32.totalorder %v1768_v46, 2 }
 0x10c   :  { %v655_v44 = vadd.s32 %v654_v51, %v650_v24  ;;  %v1026_v28 = vadd.s32 4294967169, %v703_v2  ;;  %v1097_v3 = vpop.eup %1096  ;;  %v1795_v26 = vsel %vm378_vm8, %v381_v49, %v384_v37  ;;  %v547_v18 = vadd.s32 %v1650_v21, %v1666_v50 }
 0x10d   :  { %vm1021_vm14 = vcmp.lt.s32.totalorder %v1020_v41, 0  ;;  %v580_v42 = vsel %vm1748_vm9, 0, %v578_v63  ;;  %vm597_vm15 = vcmp.lt.s32.totalorder %v1536_v8, 0  ;;  %v806_v59 = vand.u32 2139095040, %v1552_v19 }
 0x10e   :  { %v562_v45 = vsel %vm1021_vm14, 0, %v1020_v41  ;;  %v656_v22 = vadd.s32 536870912, %v655_v44  ;;  %v709_v60 = vadd.s32 1, %v1026_v28  ;;  %v487_v53 = vxor.u32 2147483648, %v1095_v29 }
 0x10f   :  { %v563_v34 = vsub.s32 32, %v562_v45  ;;  %v567_v43 = vsub.s32 4294967266, %v562_v45  ;;  %v707_v39 = vor.u32 8388608, %v706_v13  ;;  %v484_v10 = vxor.u32 2147483648, %v1097_v3 }
 0x110   :  { %vm1805_vm0 = vcmp.le.f32.partialorder %v595_v12, 0.7853982  ;;  %v657_v50 = vshrl.u32 %v656_v22, 30  ;;  %vm710_vm1 = vcmp.gt.s32.totalorder %v709_v60, 0  ;;  %v803_v30 = vand.u32 2147483647, %v1552_v19 }
 0x111   :  { %v564_v47 = vshll.u32 %v1723_v40, %v562_v45  ;;  %v565_v55 = vshrl.u32 %v547_v18, %v563_v34  ;;  %v568_v38 = vadd.s32 127, %v567_v43  ;;  %v711_v62 = vsel %vm710_vm1, %v709_v60, 0 }
 0x112   :  { %v658_v0 = vshll.u32 %v657_v50, 30  ;;  %v681_v49 = vsub.s32 4, %v657_v50  ;;  %v713_v37 = vand.u32 31, %v711_v62  ;;  %v807_v33 = vshrl.u32 %v806_v59, 23 }
 0x113   :  { %v566_v63 = vor.u32 %v565_v55, %v564_v47  ;;  %v569_v24 = vshll.u32 %v568_v38, 23  ;;  %v1811_v2 = vadd.s32 3, %v580_v42  ;;  %v651_v12 = vadd.s32 %v1734_v20, %v1740_v32 }
 0x114   :  { %v1817_v41 = vsel %vm486_vm13, %v487_v53, %v1097_v3  ;;  %v1819_v51 = vsub.s32 %v655_v44, %v658_v0  ;;  %v714_v40 = vsub.s32 32, %v713_v37  ;;  %v1821_v13 = vshll.u32 %v707_v39, 8 }
 0x115   :  { %v1825_v28 = vsel %vm483_vm12, %v1095_v29, %v484_v10  ;;  %v570_v18 = vor.u32 4788187, %v569_v24  ;;  %v712_v45 = vshrl.u32 %v711_v62, 5  ;;  %v1829_v42 = vand.u32 8388607, %v803_v30 }
 0x116   :  { %v661_v20 = vsub.s32 0, %v1819_v51  ;;  %v1834_v32 = vsel %vm597_vm15, %v681_v49, %v657_v50  ;;  %v717_v44 = vshrl.u32 %v1142_v52, %v714_v40  ;;  %v1837_v3 = vadd.s32 4294967169, %v807_v33 }
 0x117   :  { %v571_v22 = vand.u32 2147483647, %v570_v18  ;;  %v573_v60 = vcvt.s32.f32 %v566_v63  ;;  %v720_v29 = vshrl.u32 %v1143_v54, %v714_v40  ;;  %v723_v59 = vshrl.u32 %v1144_v56, %v714_v40 }
 0x118   :  { %v1023_v53 = vmin.u32 %v661_v20, %v1819_v51  ;;  %v716_v34 = vshll.u32 %v1141_v48, %v713_v37  ;;  %v719_v43 = vshll.u32 %v1142_v52, %v713_v37  ;;  %v722_v39 = vshll.u32 %v1143_v54, %v713_v37 }
 0x119   :  { %v574_v10 = vmul.f32 %v573_v60, %v571_v22  ;;  %v684_v50 = vsel %vm1805_vm0, 0, %v1834_v32  ;;  %v725_v47 = vshll.u32 %v1144_v56, %v713_v37  ;;  %v726_v55 = vshrl.u32 %v1145_v58, %v714_v40 }
 0x11a   :  { %v663_v38 = vclz %v1023_v53  ;;  %v718_v62 = vor.u32 %v717_v44, %v716_v34  ;;  %v721_v0 = vor.u32 %v720_v29, %v719_v43  ;;  %v724_v49 = vor.u32 %v723_v59, %v722_v39 }
 0x11b   :  { %v575_v33 = vxor.u32 2147483648, %v574_v10  ;;  %v727_v63 = vor.u32 %v726_v55, %v725_v47  ;;  %v728_v24 = vshll.u32 %v1145_v58, %v713_v37  ;;  %v729_v18 = vshrl.u32 %v1146_v1, %v714_v40 }
 0x11c   :  { %vm271_vm2 = vweird.f32 %v1192_v15  ;;  %v1024_v20 = vadd.s32 4294967294, %v663_v38  ;;  %v715_v22 = vshrl.u32 %v1141_v48, %v714_v40  ;;  %vm731_vm3 = vcmp.lt.s32.totalorder %v712_v45, 1 }
 0x11d   :  { %vm732_vm4 = vcmp.lt.s32.totalorder %v712_v45, 2  ;;  %vm375_vm5 = vweird.f32 %v1195_v16  ;;  %v576_v32 = vsel %vm493_vm10, %v575_v33, %v574_v10  ;;  %v730_v44 = vor.u32 %v729_v18, %v728_v24 }
 0x11e   :  { %vm733_vm6 = vcmp.lt.s32.totalorder %v712_v45, 3  ;;  %vm734_vm7 = vcmp.lt.s32.totalorder %v712_v45, 4  ;;  %v579_v37 = vsel %vm1748_vm9, %v1426_v35, %v576_v32  ;;  %vm1025_vm8 = vcmp.lt.s32.totalorder %v1024_v20, 0 }
 0x11f   :  { %v735_v60 = vsel %vm731_vm3, %v715_v22, %v718_v62  ;;  %v736_v29 = vsel %vm734_vm7, %v724_v49, 2102212464  ;;  %1098 = vcosq.f32 %v579_v37  ;;  %v666_v40 = vsel %vm1025_vm8, 0, %v1024_v20 }
 0x120   :  { %v739_v59 = vsel %vm731_vm3, %v718_v62, %v721_v0  ;;  %v740_v53 = vsel %vm734_vm7, %v727_v63, 920167782  ;;  %1100 = vsinq.f32 %v579_v37  ;;  %v667_v34 = vsub.s32 32, %v666_v40 }
 0x121   :  { %v671_v43 = vsub.s32 4294967266, %v666_v40  ;;  %v737_v39 = vsel %vm733_vm6, %v721_v0, %v736_v29  ;;  %vm479_vm10 = vweird.f32 %v1289_v36  ;;  %v668_v17 = vshll.u32 %v1819_v51, %v666_v40 }
 0x122   :  { %v741_v10 = vsel %vm733_vm6, %v724_v49, %v740_v53  ;;  %v743_v47 = vsel %vm731_vm3, %v721_v0, %v724_v49  ;;  %v744_v55 = vsel %vm734_vm7, %v730_v44, 1326507024  ;;  %v669_v38 = vshrl.u32 %v651_v12, %v667_v34 }
 0x123   :  { %v672_v33 = vadd.s32 127, %v671_v43  ;;  %v742_v62 = vsel %vm732_vm4, %v739_v59, %v741_v10  ;;  %v745_v24 = vsel %vm733_vm6, %v727_v63, %v744_v55  ;;  %v738_v18 = vsel %vm732_vm4, %v735_v60, %v737_v39 }
 0x124   :  { %v746_v20 = vsel %vm732_vm4, %v743_v47, %v745_v24  ;;  %v1875_v22 = vmul.u32.u64.low %v1821_v13, %v742_v62  ;;  %v1876_v32 = vmul.u32.u64.high %v1821_v13, %v742_v62, %v1875_v22  ;;  %v670_v51 = vor.u32 %v669_v38, %v668_v17 }
 0x125   :  { %v673_v37 = vshll.u32 %v672_v33, 23  ;;  %v1880_v0 = vmul.u32.u64.low %v1821_v13, %v746_v20  ;;  %v1881_v49 = vmul.u32.u64.high %v1821_v13, %v746_v20, %v1880_v0  ;;  %v1886_v12 = vsel %vm271_vm2, nan, %v1786_v14 }
 0x126   :  { %vm482_vm9 = vcmp.lt.s32.totalorder %v1768_v46, 2  ;;  %v585_v45 = vand.u32 3, %v1811_v2  ;;  %v813_v63 = vadd.s32 1, %v1837_v3  ;;  %v1894_v44 = vsel %vm375_vm5, nan, %v1795_v26 }
 0x127   :  { %v489_v60 = vsel %vm482_vm9, %v1825_v28, %v1817_v41  ;;  %v674_v29 = vor.u32 4788187, %v673_v37  ;;  %v688_v40 = vadd.s32 3, %v684_v50  ;;  %v754_v15 = vmul.u32 %v1821_v13, %v738_v18 }
 0x128   :  { %v757_v14 = vadd.s32 1, %v1876_v32  ;;  %v811_v46 = vor.u32 8388608, %v1829_v42  ;;  %vm814_vm11 = vcmp.gt.s32.totalorder %v813_v63, 0  ;;  %v677_v59 = vcvt.s32.f32 %v670_v51 }
 0x129   :  { %v675_v2 = vand.u32 2147483647, %v674_v29  ;;  %vm756_vm12 = vc.u32 %v1881_v49, %v1875_v22  ;;  %v815_v16 = vsel %vm814_vm11, %v813_v63, 0  ;;  %v1099_v26 = vpop.eup %1098  ;;  %vm587_vm13 = vcmp.eq.s32.totalorder %v585_v45, 0 }
 0x12a   :  { %vm590_vm14 = vcmp.eq.s32.totalorder %v585_v45, 2  ;;  %v758_v41 = vsel %vm756_vm12, %v757_v14, %v1876_v32  ;;  %v817_v28 = vand.u32 31, %v815_v16  ;;  %v1101_v3 = vpop.eup %1100  ;;  %v1906_v13 = vsel %vm479_vm10, nan, %v489_v60 }
 0x12b   :  { %vm586_vm1 = vcmp.lt.s32.totalorder %v585_v45, 2  ;;  %v678_v42 = vmul.f32 %v677_v59, %v675_v2  ;;  %v1908_v50 = vand.u32 3, %v688_v40  ;;  %v759_v53 = vadd.s32 %v758_v41, %v754_v15 }
 0x12c   :  { %v588_v34 = vxor.u32 2147483648, %v1101_v3  ;;  %v591_v43 = vxor.u32 2147483648, %v1099_v26  ;;  %v818_v39 = vsub.s32 32, %v817_v28  ;;  %v1910_v17 = vshll.u32 %v811_v46, 8 }
 0x12d   :  { %v679_v10 = vxor.u32 2147483648, %v678_v42  ;;  %v760_v47 = vadd.s32 536870912, %v759_v53  ;;  %v1915_v55 = vrot.slane %v1418_v25, %v29_v6  ;;  %v1920_v36 = vrot.slane %v1418_v25, %v33_v7 }
 0x12e   :  { %v816_v38 = vshrl.u32 %v815_v16, 5  ;;  %v820_v33 = vshll.u32 %v1141_v48, %v817_v28  ;;  %v821_v62 = vshrl.u32 %v1142_v52, %v818_v39  ;;  %v824_v24 = vshrl.u32 %v1143_v54, %v818_v39 }
 0x12f   :  { %v680_v18 = vsel %vm597_vm15, %v679_v10, %v678_v42  ;;  %v1927_v20 = vshrl.u32 %v760_v47, 30  ;;  %v823_v6 = vshll.u32 %v1142_v52, %v817_v28  ;;  %v827_v32 = vshrl.u32 %v1144_v56, %v818_v39 }
 0x130   :  { %v589_v51 = vsel %vm587_vm13, %v1099_v26, %v588_v34  ;;  %v592_v7 = vsel %vm590_vm14, %v591_v43, %v1101_v3  ;;  %v683_v37 = vsel %vm1805_vm0, %v1536_v8, %v680_v18  ;;  %v826_v0 = vshll.u32 %v1143_v54, %v817_v28  ;;  %v1963_v43 = vpop.permute.xlu0 %908 }
 0x131   :  { %1102 = vcosq.f32 %v683_v37  ;;  %v762_v63 = vshll.u32 %v1927_v20, 30  ;;  %v822_v60 = vor.u32 %v821_v62, %v820_v33  ;;  %v825_v29 = vor.u32 %v824_v24, %v823_v6 }
 0x132   :  { %vm583_vm15 = vweird.f32 %v1426_v35  ;;  %1104 = vsinq.f32 %v683_v37  ;;  %v828_v52 = vor.u32 %v827_v32, %v826_v0  ;;  %v829_v40 = vshll.u32 %v1144_v56, %v817_v28 }
 0x133   :  { %v830_v15 = vshrl.u32 %v1145_v58, %v818_v39  ;;  %v1941_v14 = vsub.s32 %v759_v53, %v762_v63  ;;  %v832_v21 = vshll.u32 %v1145_v58, %v817_v28  ;;  %v833_v46 = vshrl.u32 %v1146_v1, %v818_v39 }
 0x134   :  { %v923_v54 = vrot.slane %v1418_v25, %v37_v9  ;;  %v593_v2 = vsel %vm586_vm1, %v589_v51, %v592_v7  ;;  %v819_v59 = vshrl.u32 %v1141_v48, %v818_v39  ;;  %vm835_vm0 = vcmp.lt.s32.totalorder %v816_v38, 1 }
 0x135   :  { %v831_v16 = vor.u32 %v830_v15, %v829_v40  ;;  %vm694_vm2 = vcmp.eq.s32.totalorder %v1908_v50, 2  ;;  %v765_v56 = vsub.s32 0, %v1941_v14  ;;  %v834_v26 = vor.u32 %v833_v46, %v832_v21 }
 0x136   :  { %vm837_vm3 = vcmp.lt.s32.totalorder %v816_v38, 3  ;;  %vm838_vm4 = vcmp.lt.s32.totalorder %v816_v38, 4  ;;  %vm691_vm5 = vcmp.eq.s32.totalorder %v1908_v50, 0  ;;  %v839_v58 = vsel %vm835_vm0, %v819_v59, %v822_v60 }
 0x137   :  { %v840_v1 = vsel %vm838_vm4, %v828_v52, 2102212464  ;;  %v843_v9 = vsel %vm835_vm0, %v822_v60, %v825_v29  ;;  %v844_v45 = vsel %vm838_vm4, %v831_v16, 920167782  ;;  %vm690_vm6 = vcmp.lt.s32.totalorder %v1908_v50, 2 }
 0x138   :  { %v1027_v48 = vmin.u32 %v765_v56, %v1941_v14  ;;  %vm836_vm7 = vcmp.lt.s32.totalorder %v816_v38, 2  ;;  %v841_v41 = vsel %vm837_vm3, %v825_v29, %v840_v1  ;;  %v845_v28 = vsel %vm837_vm3, %v828_v52, %v844_v45 }
 0x139   :  { %vm687_vm8 = vweird.f32 %v1536_v8  ;;  %v842_v3 = vsel %vm836_vm7, %v839_v58, %v841_v41  ;;  %v846_v42 = vsel %vm836_vm7, %v843_v9, %v845_v28  ;;  %v847_v53 = vsel %vm835_vm0, %v825_v29, %v828_v52 }
 0x13a   :  { %v848_v34 = vsel %vm838_vm4, %v834_v26, 1326507024  ;;  %v755_v39 = vadd.s32 %v1875_v22, %v1881_v49  ;;  %v767_v10 = vclz %v1027_v48  ;;  %v927_v47 = vrot.slane %v1418_v25, %v41_v27  ;;  %v2011_v26 = vpop.permute.xlu1 %969 }
 0x13b   :  { %v931_v33 = vrot.slane %v1418_v25, %v45_v57  ;;  %v849_v62 = vsel %vm837_vm3, %v831_v16, %v848_v34  ;;  %v1975_v24 = vmul.u32.u64.low %v1910_v17, %v846_v42  ;;  %v1976_v18 = vmul.u32.u64.high %v1910_v17, %v846_v42, %v1975_v24  ;;  %v1103_v49 = vpop.eup %1102 }
 0x13c   :  { %v935_v22 = vrot.slane %v1418_v25, %v49_v61  ;;  %v594_v6 = vsel %vm583_vm15, nan, %v593_v2  ;;  %v1028_v27 = vadd.s32 4294967294, %v767_v10  ;;  %v850_v32 = vsel %vm836_vm7, %v847_v53, %v849_v62  ;;  %v1105_v51 = vpop.eup %1104 }
 0x13d   :  { %v858_v57 = vmul.u32 %v1910_v17, %v842_v3  ;;  %v695_v7 = vxor.u32 2147483648, %v1103_v49  ;;  %v1987_v37 = vmul.u32.u64.low %v1910_v17, %v850_v32  ;;  %v1988_v0 = vmul.u32.u64.high %v1910_v17, %v850_v32, %v1987_v37 }
 0x13e   :  { %v952_v63 = vmul.f32 %v1915_v55, %v1963_v43  ;;  %v692_v60 = vxor.u32 2147483648, %v1105_v51  ;;  %vm1029_vm10 = vcmp.lt.s32.totalorder %v1028_v27, 0  ;;  %v953_v61 = vmul.f32 %v1920_v36, %v1963_v43 }
 0x13f   :  { %v954_v35 = vmul.f32 %v923_v54, %v1963_v43  ;;  %v696_v38 = vsel %vm694_vm2, %v695_v7, %v1105_v51  ;;  %v770_v29 = vsel %vm1029_vm10, 0, %v1028_v27  ;;  %v861_v52 = vadd.s32 1, %v1976_v18 }
 0x140   :  { %v955_v40 = vmul.f32 %v927_v47, %v1963_v43  ;;  %v693_v17 = vsel %vm691_vm5, %v1103_v49, %v692_v60  ;;  %v771_v15 = vsub.s32 32, %v770_v29  ;;  %v775_v55 = vsub.s32 4294967266, %v770_v29 }
 0x141   :  { %v956_v21 = vmul.f32 %v931_v33, %v1963_v43  ;;  %v697_v36 = vsel %vm690_vm6, %v693_v17, %v696_v38  ;;  %v772_v46 = vshll.u32 %v1941_v14, %v770_v29  ;;  %vm860_vm9 = vc.u32 %v1988_v0, %v1975_v24 }
 0x142   :  { %v957_v54 = vmul.f32 %v935_v22, %v1963_v43  ;;  %v698_v2 = vsel %vm687_vm8, nan, %v697_v36  ;;  %v773_v59 = vshrl.u32 %v755_v39, %v771_v15  ;;  %v776_v16 = vadd.s32 127, %v775_v55 }
 0x143   :  { %v862_v56 = vsel %vm860_vm9, %v861_v52, %v1976_v18  ;;  %v960_v50 = vmul.f32 %v952_v63, %v1773_v23  ;;  %v961_v14 = vmul.f32 %v953_v61, %v1886_v12  ;;  %v962_v45 = vmul.f32 %v954_v35, %v1894_v44 }
 0x144   :  { %v863_v58 = vadd.s32 %v862_v56, %v858_v57  ;;  %v774_v1 = vor.u32 %v773_v59, %v772_v46  ;;  %v777_v9 = vshll.u32 %v776_v16, 23  ;;  %v963_v41 = vmul.f32 %v955_v40, %v1906_v13 }
 0x145   :  { %v964_v8 = vmul.f32 %v956_v21, %v594_v6  ;;  %v965_v28 = vmul.f32 %v957_v54, %v698_v2  ;;  %v972_v42 = vsub.f32 %v960_v50, %v2011_v26  ;;  %v973_v53 = vsub.f32 %v961_v14, %v2011_v26 }
 0x146   :  { %v864_v48 = vadd.s32 536870912, %v863_v58  ;;  %v778_v3 = vor.u32 4788187, %v777_v9  ;;  %v974_v23 = vsub.f32 %v962_v45, %v2011_v26  ;;  %v975_v39 = vsub.f32 %v963_v41, %v2011_v26 }
 0x147   :  { %v976_v12 = vsub.f32 %v964_v8, %v2011_v26  ;;  %v781_v44 = vcvt.s32.f32 %v774_v1  ;;  %v977_v47 = vsub.f32 %v965_v28, %v2011_v26  ;;  %980 = vst [vmem:[#allocation2] sm:$0xff] %v972_v42  ;;  %981 = vst [vmem:[#allocation2 + $0x8] sm:$0xff] %v973_v53  ;;  %v785_v62 = vsub.s32 4, %v1927_v20 }
 0x148   :  { %v2019_v34 = vshrl.u32 %v864_v48, 30  ;;  %v779_v10 = vand.u32 2147483647, %v778_v3  ;;  %982 = vst [vmem:[#allocation2 + $0x10] sm:$0xff] %v974_v23  ;;  %983 = vst [vmem:[#allocation2 + $0x18] sm:$0xff] %v975_v39  ;;  %vm701_vm11 = vcmp.lt.s32.totalorder %v1544_v4, 0  ;;  %v859_v61 = vadd.s32 %v1975_v24, %v1988_v0 }
 0x149   :  { %984 = vst [vmem:[#allocation2 + $0x20] sm:$0xff] %v976_v12  ;;  %985 = vst [vmem:[#allocation2 + $0x28] sm:$0xff] %v977_v47  ;;  %vm700_vm12 = vcmp.le.f32.partialorder %v699_v11, 0.7853982  ;;  %v786_v27 = vsel %vm701_vm11, %v785_v62, %v1927_v20  ;;  %v939_v40 = vrot.slane %v1418_v25, %v53_v31  ;;  %vm791_vm0 = vweird.f32 %v1544_v4 }
 0x14a   :  { %v866_v13 = vshll.u32 %v2019_v34, 30  ;;  %v782_v33 = vmul.f32 %v781_v44, %v779_v10  ;;  %v788_v51 = vsel %vm700_vm12, 0, %v786_v27  ;;  %v889_v50 = vsub.s32 4, %v2019_v34 }
 0x14b   :  { %v792_v63 = vadd.s32 3, %v788_v51  ;;  %v958_v0 = vmul.f32 %v939_v40, %v1963_v43  ;;  %vm805_vm2 = vcmp.lt.s32.totalorder %v1552_v19, 0  ;;  %vm804_vm3 = vcmp.le.f32.partialorder %v803_v30, 0.7853982 }
 0x14c   :  { %v867_v18 = vsub.s32 %v863_v58, %v866_v13  ;;  %v783_v22 = vxor.u32 2147483648, %v782_v33  ;;  %v890_v48 = vsel %vm805_vm2, %v889_v50, %v2019_v34  ;;  %v2080_v3 = vsub.s32 7, %v1166_v5 }
 0x14d   :  { %v793_v11 = vand.u32 3, %v792_v63  ;;  %v892_v41 = vsel %vm804_vm3, 0, %v890_v48  ;;  %vm895_vm7 = vweird.f32 %v1552_v19 }
 0x14e   :  { %v869_v49 = vsub.s32 0, %v867_v18  ;;  %v784_v6 = vsel %vm701_vm11, %v783_v22, %v782_v33  ;;  %v896_v8 = vadd.s32 3, %v892_v41  ;;  %v943_v42 = vrot.slane %v1418_v25, %v2080_v3 }
 0x14f   :  { %v787_v32 = vsel %vm700_vm12, %v1544_v4, %v784_v6  ;;  %vm798_vm14 = vcmp.eq.s32.totalorder %v793_v11, 2  ;;  %vm795_vm1 = vcmp.eq.s32.totalorder %v793_v11, 0  ;;  %vm794_vm15 = vcmp.lt.s32.totalorder %v793_v11, 2 }
 0x150   :  { %v1031_v57 = vmin.u32 %v869_v49, %v867_v18  ;;  %1106 = vcosq.f32 %v787_v32  ;;  %v897_v28 = vand.u32 3, %v896_v8  ;;  %v959_v34 = vmul.f32 %v943_v42, %v1963_v43 }
 0x151   :  { %1108 = vsinq.f32 %v787_v32 }
 0x152   :  { %v871_v7 = vclz %v1031_v57  ;;  %vm902_vm4 = vcmp.eq.s32.totalorder %v897_v28, 2  ;;  %vm899_vm5 = vcmp.eq.s32.totalorder %v897_v28, 0  ;;  %vm898_vm6 = vcmp.lt.s32.totalorder %v897_v28, 2 }
 0x154   :  { %v1032_v37 = vadd.s32 4294967294, %v871_v7 }
 0x156   :  { %vm1033_vm13 = vcmp.lt.s32.totalorder %v1032_v37, 0 }
 0x157   :  { %v874_v60 = vsel %vm1033_vm13, 0, %v1032_v37 }
 0x158   :  { %v875_v35 = vsub.s32 32, %v874_v60  ;;  %v879_v38 = vsub.s32 4294967266, %v874_v60  ;;  %v876_v29 = vshll.u32 %v867_v18, %v874_v60 }
 0x15a   :  { %v877_v52 = vshrl.u32 %v859_v61, %v875_v35  ;;  %v880_v20 = vadd.s32 127, %v879_v38  ;;  %v1107_v17 = vpop.eup %1106 }
 0x15b   :  { %v1109_v15 = vpop.eup %1108  ;;  %v799_v55 = vxor.u32 2147483648, %v1107_v17 }
 0x15c   :  { %v878_v21 = vor.u32 %v877_v52, %v876_v29  ;;  %v881_v36 = vshll.u32 %v880_v20, 23  ;;  %v796_v46 = vxor.u32 2147483648, %v1109_v15 }
 0x15d   :  { %v800_v54 = vsel %vm798_vm14, %v799_v55, %v1109_v15 }
 0x15e   :  { %v882_v24 = vor.u32 4788187, %v881_v36  ;;  %v797_v2 = vsel %vm795_vm1, %v1107_v17, %v796_v46  ;;  %v885_v56 = vcvt.s32.f32 %v878_v21 }
 0x15f   :  { %v801_v59 = vsel %vm794_vm15, %v797_v2, %v800_v54 }
 0x160   :  { %v883_v16 = vand.u32 2147483647, %v882_v24  ;;  %v802_v31 = vsel %vm791_vm0, nan, %v801_v59 }
 0x161   :  { %v966_v1 = vmul.f32 %v958_v0, %v802_v31 }
 0x162   :  { %v886_v58 = vmul.f32 %v885_v56, %v883_v16 }
 0x163   :  { %v978_v14 = vsub.f32 %v966_v1, %v2011_v26 }
 0x164   :  { %v887_v9 = vxor.u32 2147483648, %v886_v58 }
 0x165   :  { %986 = vst [vmem:[#allocation2 + $0x30] sm:$0xff] %v978_v14 }
 0x166   :  { %v888_v45 = vsel %vm805_vm2, %v887_v9, %v886_v58 }
 0x167   :  { %v891_v4 = vsel %vm804_vm3, %v1552_v19, %v888_v45 }
 0x168   :  { %1110 = vcosq.f32 %v891_v4 }
 0x169   :  { %1112 = vsinq.f32 %v891_v4 }
 0x172   :  { %v1111_v53 = vpop.eup %1110 }
 0x173   :  { %v1113_v23 = vpop.eup %1112  ;;  %v903_v39 = vxor.u32 2147483648, %v1111_v53 }
 0x174   :  { %v900_v12 = vxor.u32 2147483648, %v1113_v23 }
 0x175   :  { %v904_v30 = vsel %vm902_vm4, %v903_v39, %v1113_v23 }
 0x176   :  { %v901_v10 = vsel %vm899_vm5, %v1111_v53, %v900_v12 }
 0x177   :  { %v905_v44 = vsel %vm898_vm6, %v901_v10, %v904_v30 }
 0x178   :  { %v906_v47 = vsel %vm895_vm7, nan, %v905_v44 }
 0x179   :  { %v967_v5 = vmul.f32 %v959_v34, %v906_v47 }
 0x17b   :  { %v979_v25 = vsub.f32 %v967_v5, %v2011_v26 }
 0x17d   :  { %987 = vst [vmem:[#allocation2 + $0x38] sm:$0xff] %v979_v25 }
 0x17e   :  { %1125 = shalt.err (!%p1122_p4)
}
 0x17f   :  { %s1126_s16 = scalar_lea.hbm %s2066_s2, 1024 }
 0x180   :  { %p1127_p5 = scmp.ne.s32.totalorder %s2066_s2, %s1126_s16  ;;  %p1130_p6 = scmp.lt.u32.totalorder %s1126_s16, %s2066_s2 }
 0x182   :  { %p1132_p7 = pnand %p1130_p6, %p1127_p5 }
 0x184   :  { %1135 = shalt.err (!%p1132_p7)
}
 0x185   :  { %997 = dma.vmem_to_hbm [thread:$0]  %s995_s12, 1024, %s2066_s2, [#allocation3]  }
 0x186   :  { %1136 = dma.done.wait [#allocation3], 1024  }
 0x187   :  { %1137 = vsyncadd [#allocation3], 4294966272 }
 0x188   :  { %1001 = vsyncpa [#allocation3], 1 }

</bundles_post_ra>
